<compile_context>
chip_gen: v5e
topology: v5e:2x2
jax: 0.10.0
libtpu: 0.0.40
codegen_flags: <defaults>
</compile_context>

<pallas_src>
import functools
import math

import jax
import jax.numpy as jnp
from jax.experimental import pallas as pl
from jax.experimental.pallas import tpu as pltpu


def _round_up(x, m):
    return ((x + m - 1) // m) * m


def _pick_tile(padded_dim, candidates):
    """Largest candidate that divides padded_dim (padded_dim is 128-aligned)."""
    for c in candidates:
        if c <= padded_dim and padded_dim % c == 0:
            return c
    return padded_dim


# --------------------------------------------------------------------------- #
# Kernel: plain (M,K)x(K,N) matmul, bias init at k==0, accumulate into o_ref.
# --------------------------------------------------------------------------- #
def _masked_linear_kernel(x_ref, w_ref, b_ref, o_ref):
    @pl.when(pl.program_id(2) == 0)
    def _():
        # Initialize the resident f32 output tile with the bias (broadcast over
        # rows); subsequent K steps accumulate on top of it.
        o_ref[...] = jnp.broadcast_to(b_ref[...], o_ref.shape)

    o_ref[...] += jnp.dot(x_ref[...], w_ref[...],
                          preferred_element_type=jnp.float32)


# --------------------------------------------------------------------------- #
# One-time parameter preparation (do NOT run per forward call).
# --------------------------------------------------------------------------- #
def prepare_masked_linear(weight, mask, bias, cond_weight=None,
                          compute_dtype=jnp.bfloat16):
    """Fold mask into W, fold Wc onto the contraction axis, transpose to (K,N),
    pad to 128-aligned shapes, cast to the MXU compute dtype."""
    out_f, in_f = weight.shape
    wm_t = (weight.astype(jnp.float32) * mask.astype(jnp.float32)).T   # (in, out)
    cond_f = None
    if cond_weight is not None:
        cond_f = cond_weight.shape[1]
        wm_t = jnp.concatenate(
            [wm_t, cond_weight.astype(jnp.float32).T], axis=0)         # (in+cond, out)

    k_dim = wm_t.shape[0]
    k_pad = _round_up(k_dim, 128)
    n_pad = _round_up(out_f, 128)

    w_t = jnp.pad(wm_t, ((0, k_pad - k_dim), (0, n_pad - out_f))).astype(compute_dtype)
    bias_row = jnp.pad(bias.astype(jnp.float32), (0, n_pad - out_f)).reshape(1, n_pad)

    return {
        "w_t": w_t,                      # (K_pad, N_pad) compute_dtype
        "bias": bias_row,                # (1, N_pad) float32
        "in_features": in_f,
        "out_features": out_f,
        "cond_in_features": cond_f,
    }


# --------------------------------------------------------------------------- #
# Per-call apply (activation padding/cast only; parameters are pre-padded).
# --------------------------------------------------------------------------- #
@functools.partial(jax.jit, static_argnums=(4,))
def _masked_linear_apply(inputs, cond_inputs, w_t, bias_row, out_features):
    x = inputs
    if cond_inputs is not None:
        x = jnp.concatenate([inputs, cond_inputs.astype(inputs.dtype)], axis=1)

    B, K = x.shape
    k_pad, n_pad = w_t.shape
    compute_dtype = w_t.dtype
    itemsize = jnp.dtype(compute_dtype).itemsize

    # ---- tile selection (static under jit) ----------------------------------
    if B <= 256:
        b_pad = _round_up(B, 16)          # bf16 packs 16 sublanes per vreg
        tm = b_pad
    else:
        b_pad = _round_up(B, 128)
        tm = _pick_tile(b_pad, (512, 256, 128))
    tn = _pick_tile(n_pad, (1024, 512, 256, 128))
    if b_pad // tm == 1:
        # v7x has 2 TensorCores sharded over the parallel axes: keep >=2 tiles
        # on the out axis when the batch axis has only one.
        while tn > 128 and n_pad // tn < 2:
            tn //= 2
    tk = k_pad if k_pad <= 2048 else _pick_tile(k_pad, (2048, 1024, 512, 256, 128))

    grid = (b_pad // tm, n_pad // tn, k_pad // tk)

    # ---- activation padding (cheap; params already padded at init) ----------
    x_p = jnp.pad(x.astype(compute_dtype), ((0, b_pad - B), (0, k_pad - K)))

    x_spec = pl.BlockSpec((tm, tk), lambda i, j, k: (i, k))
    w_spec = pl.BlockSpec((tk, tn), lambda i, j, k: (k, j))
    b_spec = pl.BlockSpec((1, tn), lambda i, j, k: (0, j))
    o_spec = pl.BlockSpec((tm, tn), lambda i, j, k: (i, j))

    # Double-buffered VMEM estimate (worst case with the caps above ~16 MiB);
    # raise the scoped limit explicitly (v5e default is 16 MiB) but stay within
    # v7x's 32 MiB scoped / 64 MiB physical budget.
    vmem_est = 2 * (tm * tk + tk * tn) * itemsize + 2 * (tm * tn * 4) + 2 * tn * 4
    vmem_limit = int(min(max(2 * vmem_est, 16 * 1024 * 1024), 32 * 1024 * 1024))

    flops = 2 * b_pad * n_pad * k_pad
    bytes_accessed = (
        b_pad * k_pad * itemsize * (n_pad // tn)      # x re-streamed per out tile
        + k_pad * n_pad * itemsize * (b_pad // tm)    # W re-streamed per batch tile
        + n_pad * 4 * (b_pad // tm)                   # bias
        + b_pad * n_pad * 4                           # output (f32) written once
    )

    out_p = pl.pallas_call(
        _masked_linear_kernel,
        out_shape=jax.ShapeDtypeStruct((b_pad, n_pad), jnp.float32),
        grid=grid,
        in_specs=[x_spec, w_spec, b_spec],
        out_specs=o_spec,
        compiler_params=pltpu.CompilerParams(
            dimension_semantics=("parallel", "parallel", "arbitrary"),
            vmem_limit_bytes=vmem_limit),
        cost_estimate=pl.CostEstimate(
            flops=flops, transcendentals=0, bytes_accessed=bytes_accessed),
    )(x_p, w_t, bias_row)

    return out_p[:B, :out_features]


def masked_linear(inputs, params, cond_inputs=None):
    """Forward pass of MaskedLinear using pre-prepared params."""
    if (cond_inputs is None) != (params["cond_in_features"] is None):
        raise ValueError("cond_inputs must match how params were prepared")
    return _masked_linear_apply(inputs, cond_inputs, params["w_t"],
                                params["bias"], params["out_features"])


# --------------------------------------------------------------------------- #
# Demo / self-test.
# --------------------------------------------------------------------------- #
if __name__ == "__main__":
    batch = 8
    in_features = 32
    out_features = 32
    cond_in_features = 16

    key = jax.random.PRNGKey(0)
    k_x, k_w, k_b, k_c, k_wc = jax.random.split(key, 5)

    # nn.Linear-style init, deterministic synthetic parameters.
    bound = 1.0 / math.sqrt(in_features)
    weight = jax.random.uniform(k_w, (out_features, in_features),
                                minval=-bound, maxval=bound, dtype=jnp.float32)
    bias = jax.random.uniform(k_b, (out_features,),
                              minval=-bound, maxval=bound, dtype=jnp.float32)
    cond_bound = 1.0 / math.sqrt(cond_in_features)
    cond_weight = jax.random.uniform(k_wc, (out_features, cond_in_features),
                                     minval=-cond_bound, maxval=cond_bound,
                                     dtype=jnp.float32)

    # MADE-style autoregressive mask.
    row = jnp.arange(out_features)[:, None]
    col = jnp.arange(in_features)[None, :]
    mask = (col <= row).astype(jnp.float32)

    inputs = jax.random.normal(k_x, (batch, in_features), dtype=jnp.float32)
    cond_inputs = jax.random.normal(k_c, (batch, cond_in_features), dtype=jnp.float32)

    # --- conditioning path ----------------------------------------------------
    params = prepare_masked_linear(weight, mask, bias, cond_weight)
    out = jax.block_until_ready(masked_linear(inputs, params, cond_inputs))
    assert out.shape == (batch, out_features)

    # bf16-consistent reference (same operand rounding as the kernel, f32 accum)
    x_cat = jnp.concatenate([inputs, cond_inputs], axis=1)
    x_bf = x_cat.astype(jnp.bfloat16).astype(jnp.float32)
    w_bf = params["w_t"].astype(jnp.float32)[:x_cat.shape[1], :out_features]
    ref_bf16 = x_bf @ w_bf + bias[None, :]
    assert jnp.allclose(out, ref_bf16, atol=1e-3, rtol=1e-3), "mismatch vs bf16 reference"

    # full-precision (module-semantics) reference, loose tolerance for bf16 operands
    ref_f32 = inputs @ (weight * mask).T + bias[None, :] + cond_inputs @ cond_weight.T
    assert jnp.allclose(out, ref_f32, atol=5e-2, rtol=5e-2), "mismatch vs f32 reference"

    # --- no-conditioning path -------------------------------------------------
    params_nc = prepare_masked_linear(weight, mask, bias)
    out_nc = jax.block_until_ready(masked_linear(inputs, params_nc))
    ref_nc = inputs @ (weight * mask).T + bias[None, :]
    assert out_nc.shape == (batch, out_features)
    assert jnp.allclose(out_nc, ref_nc, atol=5e-2, rtol=5e-2), "mismatch (no cond)"

    print("KERNEL_OK")
</pallas_src>

<mosaic_0001>
module attributes {stable_mosaic.version = 11 : i64} {
  func.func @_masked_linear_kernel(%arg0: i32, %arg1: i32, %arg2: i32, %arg3: memref<16x128xbf16, #tpu.memory_space<vmem>>, %arg4: memref<128x128xbf16, #tpu.memory_space<vmem>>, %arg5: memref<1x128xf32, #tpu.memory_space<vmem>>, %arg6: memref<16x128xf32, #tpu.memory_space<vmem>>) attributes {dimension_semantics = [#tpu.dimension_semantics<parallel>, #tpu.dimension_semantics<parallel>, #tpu.dimension_semantics<arbitrary>], iteration_bounds = array<i64: 1, 1, 1>, scalar_prefetch = 0 : i64, scratch_operands = 0 : i64, tpu.core_type = #tpu.core_type<tc>, window_params = [{transform_indices = @transform_0, window_bounds = array<i64: 16, 128>}, {transform_indices = @transform_1, window_bounds = array<i64: 128, 128>}, {transform_indices = @transform_2, window_bounds = array<i64: 1, 128>}, {transform_indices = @transform_3, window_bounds = array<i64: 16, 128>}]} {
    %c0_i32 = arith.constant 0 : i32
    %0 = arith.cmpi eq, %arg2, %c0_i32 : i32
    %1 = arith.extui %0 : i1 to i32
    %c0_i32_0 = arith.constant 0 : i32
    %2 = arith.cmpi ne, %1, %c0_i32_0 : i32
    scf.if %2 {
      %c0_8 = arith.constant 0 : index
      %c0_9 = arith.constant 0 : index
      %9 = vector.load %arg5[%c0_8, %c0_9] : memref<1x128xf32, #tpu.memory_space<vmem>>, vector<1x128xf32>
      %10 = vector.shape_cast %9 : vector<1x128xf32> to vector<1x128xf32>
      %11 = vector.broadcast %10 : vector<1x128xf32> to vector<16x128xf32>
      %c0_10 = arith.constant 0 : index
      %c0_11 = arith.constant 0 : index
      %12 = vector.load %arg6[%c0_10, %c0_11] : memref<16x128xf32, #tpu.memory_space<vmem>>, vector<16x128xf32>
      tpu.vector_store %arg6[%c0_10, %c0_11], %11 {strides = array<i32>} : memref<16x128xf32, #tpu.memory_space<vmem>>, vector<16x128xf32>,
    } else {
    }
    %c0 = arith.constant 0 : index
    %c0_1 = arith.constant 0 : index
    %3 = vector.load %arg6[%c0, %c0_1] : memref<16x128xf32, #tpu.memory_space<vmem>>, vector<16x128xf32>
    %c0_2 = arith.constant 0 : index
    %c0_3 = arith.constant 0 : index
    %4 = vector.load %arg3[%c0_2, %c0_3] : memref<16x128xbf16, #tpu.memory_space<vmem>>, vector<16x128xbf16>
    %c0_4 = arith.constant 0 : index
    %c0_5 = arith.constant 0 : index
    %5 = vector.load %arg4[%c0_4, %c0_5] : memref<128x128xbf16, #tpu.memory_space<vmem>>, vector<128x128xbf16>
    %cst = arith.constant dense<0.000000e+00> : vector<16x128xf32>
    %6 = tpu.matmul %4, %5, %cst {dimension_numbers = #tpu.dot_dimension_numbers<[1], [0], [0], [1], [0, 0, 1, 1], [], []>} : vector<16x128xbf16>, vector<128x128xbf16>, vector<16x128xf32> -> vector<16x128xf32>
    %7 = arith.addf %3, %6 : vector<16x128xf32>
    %c0_6 = arith.constant 0 : index
    %c0_7 = arith.constant 0 : index
    %8 = vector.load %arg6[%c0_6, %c0_7] : memref<16x128xf32, #tpu.memory_space<vmem>>, vector<16x128xf32>
    tpu.vector_store %arg6[%c0_6, %c0_7], %7 {strides = array<i32>} : memref<16x128xf32, #tpu.memory_space<vmem>>, vector<16x128xf32>,
    return
  }
  func.func @transform_0(%arg0: i32, %arg1: i32, %arg2: i32) -> (i32, i32) {
    %c0_i32 = arith.constant 0 : i32
    return %arg0, %arg2 : i32, i32
  }
  func.func @transform_1(%arg0: i32, %arg1: i32, %arg2: i32) -> (i32, i32) {
    %c0_i32 = arith.constant 0 : i32
    return %arg2, %arg1 : i32, i32
  }
  func.func @transform_2(%arg0: i32, %arg1: i32, %arg2: i32) -> (i32, i32) {
    %c0_i32 = arith.constant 0 : i32
    %c0_i32_0 = arith.constant 0 : i32
    return %c0_i32, %arg1 : i32, i32
  }
  func.func @transform_3(%arg0: i32, %arg1: i32, %arg2: i32) -> (i32, i32) {
    %c0_i32 = arith.constant 0 : i32
    return %arg0, %arg1 : i32, i32
  }
}

</mosaic_0001>

<bundles_post_ra>
// kernel: _masked_linear_apply.1
= control target key start
LH: loop header
LB: loop body
LE: loop exit
PB: predicated region body
PF: predicated region fallthrough
CT: control target
= control target key end

     0   :  { %8 = vsyncpa [#allocation3], 0  ;;  %s212_s15 = smov [#allocation2]   ;;  %s213_s17 = smov 64   ;;  %s250_s0 = inlined_call_operand.vmem [shape: bf16[16,128], index: 0, kind: input, shape index: {}]   ;;  %s251_s1 = inlined_call_operand.hbm [shape: bf16[128,128], index: 1, kind: input, shape index: {}]   ;;  %s252_s2 = inlined_call_operand.vmem [shape: f32[1,128], index: 2, kind: input, shape index: {}]   ;;  %s253_s3 = inlined_call_operand.vmem [shape: f32[16,128], index: 3, kind: output, shape index: {}]  }
   0x1   :  { %s15_s14 = sshll.u32 %s251_s1, 4  ;;  %s17_s16 = sshll.u32 %s212_s15, 4  ;;  %s16_s14 = int_to_ptr.hbm [resolvable:$true] %s15_s14  ;;  %s18_s16 = int_to_ptr.vmem [resolvable:$true] %s17_s16 }
   0x2   :  { %s214_s18 = smov 4  }
   0x3   :  { %23 = dma.hbm_to_vmem [thread:$0]  %s16_s14, 1024, %s18_s16, [#allocation3], %s213_s17, %s213_s17, %s214_s18  }
   0x4   :  { %210 = dma.done.wait [#allocation3], 1024  }
   0x5   :  { %211 = vsyncadd [#allocation3], 4294966272  ;;  %v181_v0 = vld [vmem:[#allocation2 + $0x38] sm:$0xff]  ;;  %v180_v1 = vld [vmem:[#allocation2 + $0x30] sm:$0xff] }
   0x6   :  { %114 = vmatpush.bf16.msra.mxu0 %v181_v0  ;;  %v179_v2 = vld [vmem:[#allocation2 + $0x28] sm:$0xff]  ;;  %v178_v3 = vld [vmem:[#allocation2 + $0x20] sm:$0xff]  ;;  %v177_v4 = vld [vmem:[#allocation2 + $0x18] sm:$0xff] }
   0x7   :  { %v176_v5 = vld [vmem:[#allocation2 + $0x10] sm:$0xff]  ;;  %v175_v6 = vld [vmem:[#allocation2 + $0x8] sm:$0xff]  ;;  %v174_v7 = vld [vmem:[#allocation2] sm:$0xff] }
   0x8   :  { %v173_v8 = vld [vmem:[%s250_s0] sm:$0xff] }
   0x9   :  { %v185_v9 = vld [vmem:[%s252_s2] ss:$0 sm:$0xff] }
   0xa   :  { %115 = vmatpush.bf16.msra.mxu0 %v180_v1 }
   0xe   :  { %116 = vmatpush.bf16.msra.mxu0 %v179_v2 }
  0x12   :  { %117 = vmatpush.bf16.msra.mxu0 %v178_v3 }
  0x16   :  { %118 = vmatpush.bf16.msra.mxu0 %v177_v4 }
  0x1a   :  { %119 = vmatpush.bf16.msra.mxu0 %v176_v5 }
  0x1e   :  { %120 = vmatpush.bf16.msra.mxu0 %v175_v6 }
  0x22   :  { %121 = vmatpush.bf16.msra.mxu0 %v174_v7 }
  0x25   :  { %122 = vmatmul.bf16.vlgmr.msra.gmra.mxu0 %v173_v8 }
  0xa2   :  { %v123_v10 = vpop.f32.mrf.mxu0 }
  0xa3   :  { %v128_v11 = vadd.f32 %v185_v9, %v123_v10 }
  0xa5   :  { %130 = vst [vmem:[%s253_s3] sm:$0xff] %v128_v11 }
  0xaa   :  { %v125_v12 = vpop.f32.mrf.mxu0 }
  0xab   :  { %v129_v13 = vadd.f32 %v185_v9, %v125_v12 }
  0xad   :  { %131 = vst [vmem:[%s253_s3 + $0x8] sm:$0xff] %v129_v13 }
  0xae   :  { %136 = vsyncpa [#allocation3], 1 }

</bundles_post_ra>
